<compile_context>
chip_gen: v6e
topology: v6e:2x2x1
jax: 0.10.0
libtpu: 0.0.40
codegen_flags: <defaults>
</compile_context>

<pallas_src>
import jax
import jax.numpy as jnp
from jax.experimental import pallas as pl
from jax.experimental.pallas import tpu as pltpu


def _round_up(x: int, m: int) -> int:
    return (x + m - 1) // m * m


def critic_kernel(s_ref, w1_ref, w2_ref, bw_ref, b3_ref, o_ref):
    # Transposed dataflow: activations are (Hp, TB), lane-dense in the batch.
    x = s_ref[...]                                         # (D, TB)
    # fc1 + tanh : (Hp, D) @ (D, TB) -> (Hp, TB); bias is an (Hp, 1) column.
    h1 = jnp.tanh(
        jnp.dot(w1_ref[...], x, preferred_element_type=jnp.float32)
        + bw_ref[:, 0:1]
    )
    # fc2 + tanh : (Hp, Hp) @ (Hp, TB) -> (Hp, TB)
    h2 = jnp.tanh(
        jnp.dot(w2_ref[...], h1.astype(w2_ref.dtype),
                preferred_element_type=jnp.float32)
        + bw_ref[:, 1:2]
    )
    # fc3 (value head, N=1): VPU multiply by the (Hp, 1) w3 column + sublane
    # reduce -> lane-dense (1, TB) row.  b3 is an SMEM scalar.
    v = jnp.sum(h2 * bw_ref[:, 2:3], axis=0, keepdims=True) + b3_ref[0, 0]
    o_ref[...] = v.astype(o_ref.dtype)


def critic_forward(s, params, *, block_b: int = 2048, use_bf16: bool = False):
    """Fused 3-layer MLP critic.  s: (B, state_dim) float32 -> (B, 1) float32."""
    w1, b1, w2, b2, w3, b3 = params
    B, D = s.shape
    H = w1.shape[1]

    # Lane-pad the hidden width to a multiple of 128 (exact: zeros stay zeros).
    Hp = _round_up(H, 128)
    pad_h = Hp - H

    # Transposed weights (out_features, in_features) so the kernel does W @ x.
    w1t = jnp.pad(w1.T, ((0, pad_h), (0, 0)))                     # (Hp, D)
    w2t = jnp.pad(w2.T, ((0, pad_h), (0, pad_h)))                 # (Hp, Hp)
    # Pack the b1 / b2 / w3 columns into one resident (Hp, 3) f32 array.
    bw = jnp.pad(
        jnp.concatenate(
            [b1.reshape(H, 1), b2.reshape(H, 1), w3.reshape(H, 1)], axis=1
        ),
        ((0, pad_h), (0, 0)),
    )                                                             # (Hp, 3)
    b3s = b3.reshape(1, 1)                                        # SMEM scalar

    # Only the MXU operands go bf16; elementwise math stays f32 (v5e-safe).
    mxu_dtype = jnp.bfloat16 if use_bf16 else jnp.float32
    w1t = w1t.astype(mxu_dtype)
    w2t = w2t.astype(mxu_dtype)

    # Batch tiling (lane axis of the transposed activations):
    #  * balanced tiles -> < 128 rows of padding per tile,
    #  * TB multiple of 128 -> lane-dense input / activations / output,
    #  * >= 2 tiles when B > 128 so the parallel axis shards across v7x TCs.
    num_tiles = max(1, pl.cdiv(B, block_b))
    if B > 128:
        num_tiles = max(num_tiles, 2)
    TB = _round_up(pl.cdiv(B, num_tiles), 128)
    Bp = _round_up(B, TB)
    grid = (Bp // TB,)

    # Streamed input: transposed + batch-padded, (D, Bp).
    sT = jnp.pad(s.T.astype(mxu_dtype), ((0, 0), (0, Bp - B)))

    cost = pl.CostEstimate(
        flops=2 * Bp * (D * Hp + Hp * Hp + Hp),
        transcendentals=2 * Bp * Hp,
        bytes_accessed=(sT.nbytes + 4 * Bp + w1t.nbytes + w2t.nbytes
                        + bw.nbytes + b3s.nbytes),
    )

    out = pl.pallas_call(
        critic_kernel,
        out_shape=jax.ShapeDtypeStruct((1, Bp), jnp.float32),
        grid=grid,
        in_specs=[
            pl.BlockSpec((D, TB), lambda i: (0, i)),     # streamed s^T tiles
            pl.BlockSpec((Hp, D), lambda i: (0, 0)),     # resident W1^T
            pl.BlockSpec((Hp, Hp), lambda i: (0, 0)),    # resident W2^T
            pl.BlockSpec((Hp, 3), lambda i: (0, 0)),     # resident b1|b2|w3 cols
            pl.BlockSpec(memory_space=pltpu.MemorySpace.SMEM),  # b3 scalar
        ],
        out_specs=pl.BlockSpec((1, TB), lambda i: (0, i)),  # lane-dense row
        compiler_params=pltpu.CompilerParams(
            dimension_semantics=("parallel",),
        ),
        cost_estimate=cost,
    )(sT, w1t, w2t, bw, b3s)
    return out[0, :B].reshape(B, 1)


def init_critic_params(key, state_dim, hidden_width):
    """Deterministic orthogonal init (gain=1.0), zero biases — mirrors
    orthogonal_init() in the PyTorch module."""
    k1, k2, k3 = jax.random.split(key, 3)
    ortho = jax.nn.initializers.orthogonal(scale=1.0)
    # Weights stored (in, out); the wrapper transposes for the kernel.
    w1 = ortho(k1, (state_dim, hidden_width), jnp.float32)
    b1 = jnp.zeros((1, hidden_width), jnp.float32)
    w2 = ortho(k2, (hidden_width, hidden_width), jnp.float32)
    b2 = jnp.zeros((1, hidden_width), jnp.float32)
    w3 = ortho(k3, (hidden_width, 1), jnp.float32)
    b3 = jnp.zeros((1, 1), jnp.float32)
    return (w1, b1, w2, b2, w3, b3)


def critic_reference(s, params):
    """Pure-JAX reference for correctness check."""
    w1, b1, w2, b2, w3, b3 = params
    h1 = jnp.tanh(s @ w1 + b1)
    h2 = jnp.tanh(h1 @ w2 + b2)
    return h2 @ w3 + b3


if __name__ == "__main__":
    key = jax.random.PRNGKey(0)
    k_param, k_input = jax.random.split(key)

    batch = 8
    state_dim = 16
    hidden_width = 32

    params = init_critic_params(k_param, state_dim, hidden_width)
    s = jax.random.normal(k_input, (batch, state_dim), dtype=jnp.float32)

    v = critic_forward(s, params)
    v = jax.block_until_ready(v)

    v_ref = critic_reference(s, params)
    assert v.shape == (batch, 1), v.shape
    assert jnp.allclose(v, v_ref, atol=1e-5, rtol=1e-5), (
        jnp.max(jnp.abs(v - v_ref))
    )

    print("KERNEL_OK")
</pallas_src>

<mosaic_0001>
module attributes {stable_mosaic.version = 11 : i64} {
  func.func @critic_kernel(%arg0: i32, %arg1: memref<16x128xf32, #tpu.memory_space<vmem>>, %arg2: memref<128x16xf32, #tpu.memory_space<vmem>>, %arg3: memref<128x128xf32, #tpu.memory_space<vmem>>, %arg4: memref<128x3xf32, #tpu.memory_space<vmem>>, %arg5: memref<1x1xf32, #tpu.memory_space<smem>>, %arg6: memref<1x128xf32, #tpu.memory_space<vmem>>) attributes {dimension_semantics = [#tpu.dimension_semantics<parallel>], iteration_bounds = array<i64: 1>, scalar_prefetch = 0 : i64, scratch_operands = 0 : i64, tpu.core_type = #tpu.core_type<tc>, window_params = [{transform_indices = @transform_0, window_bounds = array<i64: 16, 128>}, {pipeline_mode = #tpu.pipeline_mode<synchronous>, transform_indices = @transform_1, window_bounds = array<i64: 128, 16>}, {pipeline_mode = #tpu.pipeline_mode<synchronous>, transform_indices = @transform_2, window_bounds = array<i64: 128, 128>}, {pipeline_mode = #tpu.pipeline_mode<synchronous>, transform_indices = @transform_3, window_bounds = array<i64: 128, 3>}, {transform_indices = @transform_4, window_bounds = array<i64: 1, 1>}, {transform_indices = @transform_5, window_bounds = array<i64: 1, 128>}]} {
    %c0 = arith.constant 0 : index
    %c0_0 = arith.constant 0 : index
    %0 = vector.load %arg1[%c0, %c0_0] : memref<16x128xf32, #tpu.memory_space<vmem>>, vector<16x128xf32>
    %c0_1 = arith.constant 0 : index
    %c0_2 = arith.constant 0 : index
    %1 = vector.load %arg2[%c0_1, %c0_2] : memref<128x16xf32, #tpu.memory_space<vmem>>, vector<128x16xf32>
    %cst = arith.constant dense<0.000000e+00> : vector<128x128xf32>
    %2 = tpu.matmul %1, %0, %cst {dimension_numbers = #tpu.dot_dimension_numbers<[1], [0], [0], [1], [0, 0, 1, 1], [], []>} : vector<128x16xf32>, vector<16x128xf32>, vector<128x128xf32> -> vector<128x128xf32>
    %c0_3 = arith.constant 0 : index
    %c0_4 = arith.constant 0 : index
    %3 = vector.load %arg4[%c0_3, %c0_4] : memref<128x3xf32, #tpu.memory_space<vmem>>, vector<128x1xf32>
    %4 = vector.broadcast %3 : vector<128x1xf32> to vector<128x128xf32>
    %5 = arith.addf %2, %4 : vector<128x128xf32>
    %6 = math.tanh %5 : vector<128x128xf32>
    %c0_5 = arith.constant 0 : index
    %c0_6 = arith.constant 0 : index
    %7 = vector.load %arg3[%c0_5, %c0_6] : memref<128x128xf32, #tpu.memory_space<vmem>>, vector<128x128xf32>
    %cst_7 = arith.constant dense<0.000000e+00> : vector<128x128xf32>
    %8 = tpu.matmul %7, %6, %cst_7 {dimension_numbers = #tpu.dot_dimension_numbers<[1], [0], [0], [1], [0, 0, 1, 1], [], []>} : vector<128x128xf32>, vector<128x128xf32>, vector<128x128xf32> -> vector<128x128xf32>
    %c0_8 = arith.constant 0 : index
    %c1 = arith.constant 1 : index
    %9 = vector.load %arg4[%c0_8, %c1] : memref<128x3xf32, #tpu.memory_space<vmem>>, vector<128x1xf32>
    %10 = vector.broadcast %9 : vector<128x1xf32> to vector<128x128xf32>
    %11 = arith.addf %8, %10 : vector<128x128xf32>
    %12 = math.tanh %11 : vector<128x128xf32>
    %c0_9 = arith.constant 0 : index
    %c2 = arith.constant 2 : index
    %13 = vector.load %arg4[%c0_9, %c2] : memref<128x3xf32, #tpu.memory_space<vmem>>, vector<128x1xf32>
    %14 = vector.broadcast %13 : vector<128x1xf32> to vector<128x128xf32>
    %15 = arith.mulf %12, %14 : vector<128x128xf32>
    %cst_10 = arith.constant dense<0.000000e+00> : vector<128xf32>
    %16 = vector.multi_reduction <add>, %15, %cst_10 [0] : vector<128x128xf32> to vector<128xf32>
    %17 = vector.shape_cast %16 : vector<128xf32> to vector<1x128xf32>
    %c0_11 = arith.constant 0 : index
    %c0_12 = arith.constant 0 : index
    %18 = memref.load %arg5[%c0_11, %c0_12] : memref<1x1xf32, #tpu.memory_space<smem>>
    %19 = vector.broadcast %18 : f32 to vector<1x128xf32>
    %20 = arith.addf %17, %19 : vector<1x128xf32>
    %c0_13 = arith.constant 0 : index
    %c0_14 = arith.constant 0 : index
    %21 = vector.load %arg6[%c0_13, %c0_14] : memref<1x128xf32, #tpu.memory_space<vmem>>, vector<1x128xf32>
    tpu.vector_store %arg6[%c0_13, %c0_14], %20 {strides = array<i32>} : memref<1x128xf32, #tpu.memory_space<vmem>>, vector<1x128xf32>,
    return
  }
  func.func @transform_0(%arg0: i32) -> (i32, i32) {
    %c0_i32 = arith.constant 0 : i32
    %c0_i32_0 = arith.constant 0 : i32
    return %c0_i32, %arg0 : i32, i32
  }
  func.func @transform_1(%arg0: i32) -> (i32, i32) {
    %c0_i32 = arith.constant 0 : i32
    %c0_i32_0 = arith.constant 0 : i32
    %c0_i32_1 = arith.constant 0 : i32
    return %c0_i32, %c0_i32_0 : i32, i32
  }
  func.func @transform_2(%arg0: i32) -> (i32, i32) {
    %c0_i32 = arith.constant 0 : i32
    %c0_i32_0 = arith.constant 0 : i32
    %c0_i32_1 = arith.constant 0 : i32
    return %c0_i32, %c0_i32_0 : i32, i32
  }
  func.func @transform_3(%arg0: i32) -> (i32, i32) {
    %c0_i32 = arith.constant 0 : i32
    %c0_i32_0 = arith.constant 0 : i32
    %c0_i32_1 = arith.constant 0 : i32
    return %c0_i32, %c0_i32_0 : i32, i32
  }
  func.func @transform_4(%arg0: i32) -> (i32, i32) {
    %c0_i32 = arith.constant 0 : i32
    %c0_i32_0 = arith.constant 0 : i32
    %c0_i32_1 = arith.constant 0 : i32
    return %c0_i32, %c0_i32_0 : i32, i32
  }
  func.func @transform_5(%arg0: i32) -> (i32, i32) {
    %c0_i32 = arith.constant 0 : i32
    %c0_i32_0 = arith.constant 0 : i32
    return %c0_i32, %arg0 : i32, i32
  }
}

</mosaic_0001>

<bundles_post_ra>
// kernel: tpu_custom_call.1
= control target key start
LH: loop header
LB: loop body
LE: loop exit
PB: predicated region body
PF: predicated region fallthrough
CT: control target
= control target key end

     0   :  { %vm136_vm0 = vcmask 130048   ;;  %v991_v4 = vmov 0   ;;  %s1274_s0 = inlined_call_operand.vmem [shape: f32[16,128], index: 0, kind: input, shape index: {}]   ;;  %s1275_s1 = inlined_call_operand.vmem [shape: f32[128,16], index: 1, kind: input, shape index: {}]   ;;  %s1276_s2 = inlined_call_operand.vmem [shape: f32[128,128], index: 2, kind: input, shape index: {}]   ;;  %s1277_s3 = inlined_call_operand.vmem [shape: f32[128,3], index: 3, kind: input, shape index: {}]   ;;  %s1278_s4 = inlined_call_operand.<no memory space> [shape: f32[1,1], index: 4, kind: input, shape index: {}]   ;;  %s1279_s5 = inlined_call_operand.hbm [shape: f32[1,128], index: 5, kind: output, shape index: {}]  }
   0x1   :  { %v23_v0 = vld [vmem:[%s1274_s0 + $0x8] sm:$0xff]  ;;  %v22_v1 = vld [vmem:[%s1274_s0] sm:$0xff]  ;;  %892 = vset.pattern.permute.xlu0 %v991_v4  ;;  %v26_v5 = vld [vmem:[%s1275_s1 + $0x10] sm:$0xff]  ;;  %893 = vset.pattern.permute.xlu1 %v991_v4 }
   0x2   :  { %v24_v2 = vld [vmem:[%s1275_s1] sm:$0xff]  ;;  %772 = vmatprep.subr.mxu0 %v23_v0  ;;  %v25_v3 = vld [vmem:[%s1275_s1 + $0x8] sm:$0xff]  ;;  %v27_v6 = vld [vmem:[%s1275_s1 + $0x18] sm:$0xff] }
   0x3   :  { %776 = vmatprep.mubr.msk.f32.mxu0 %vm136_vm0, %v24_v2  ;;  %773 = vmatpush3.msra.mxu0 %v23_v0  ;;  %v1049_v7 = vld [vmem:[%s1277_s3 + $0x78] sm:$0xff]  ;;  %v1054_v8 = vld [vmem:[%s1277_s3 + $0x68] sm:$0xff]  ;;  %v28_v9 = vld [vmem:[%s1275_s1 + $0x20] sm:$0xff] }
   0x4   :  { %774 = vmatprep.subr.mxu0 %v22_v1  ;;  %133 = vperm.xlu0 %892, %v1049_v7   ;;  %v1064_v10 = vld [vmem:[%s1277_s3 + $0x70] sm:$0xff]  ;;  %v1069_v11 = vld [vmem:[%s1277_s3 + $0x60] sm:$0xff]  ;;  %v29_v12 = vld [vmem:[%s1275_s1 + $0x28] sm:$0xff] }
   0x5   :  { %775 = vmatpush3.msra.mxu0 %v22_v1  ;;  %123 = vperm.xlu1 %893, %v1054_v8   ;;  %v30_v13 = vld [vmem:[%s1275_s1 + $0x30] sm:$0xff] }
   0x6   :  { %777 = vmatmul.mubr.msk.f32.vlgmr.msra.gmra.mxu0 %vm136_vm0, %v25_v3 }
   0x7   :  { %779 = vmatprep.mubr.msk.f32.mxu0 %vm136_vm0, %v26_v5 }
   0x8   :  { %128 = vperm.xlu0 %892, %v1064_v10  }
   0x9   :  { %118 = vperm.xlu1 %893, %v1069_v11  }
   0xa   :  { %780 = vmatmul.mubr.msk.f32.gmra.mxu0 %vm136_vm0, %v27_v6 }
   0xb   :  { %782 = vmatprep.mubr.msk.f32.mxu0 %vm136_vm0, %v28_v9 }
   0xc   :  { %11 = vsyncpa [#allocation4], 0  ;;  %v1084_v14 = vld [vmem:[%s1277_s3 + $0x58] sm:$0xff]  ;;  %v1089_v15 = vld [vmem:[%s1277_s3 + $0x50] sm:$0xff]  ;;  %v992_v37 = vmov 1   ;;  %v993_v38 = vmov 2  }
   0xd   :  { %v31_v16 = vld [vmem:[%s1275_s1 + $0x38] sm:$0xff]  ;;  %v32_v17 = vld [vmem:[%s1275_s1 + $0x40] sm:$0xff]  ;;  %113 = vperm.xlu0 %892, %v1084_v14   ;;  %108 = vperm.xlu1 %893, %v1089_v15   ;;  %v1104_v18 = vld [vmem:[%s1277_s3 + $0x48] sm:$0xff]  ;;  %s994_s11 = smov [#allocation3]  }
   0xe   :  { %783 = vmatmul.mubr.msk.f32.gmra.mxu0 %vm136_vm0, %v29_v12  ;;  %v1109_v19 = vld [vmem:[%s1277_s3 + $0x40] sm:$0xff]  ;;  %v33_v20 = vld [vmem:[%s1275_s1 + $0x48] sm:$0xff]  ;;  %v34_v21 = vld [vmem:[%s1275_s1 + $0x50] sm:$0xff]  ;;  %s698_s12 = sshll.u32 %s994_s11, 4  ;;  %s699_s12 = int_to_ptr.vmem [resolvable:$true] %s698_s12 }
   0xf   :  { %785 = vmatprep.mubr.msk.f32.mxu0 %vm136_vm0, %v30_v13  ;;  %v47_v22 = vld [vmem:[%s1277_s3 + $0x38] sm:$0xff]  ;;  %v1127_v23 = vld [vmem:[%s1277_s3 + $0x30] sm:$0xff]  ;;  %v36_v25 = vld [vmem:[%s1275_s1 + $0x60] sm:$0xff]  ;;  %s969_s13 = scalar_lea.vmem %s699_s12, 16  ;;  %s973_s14 = scalar_lea.vmem %s699_s12, 32 }
  0x10   :  { %v35_v24 = vld [vmem:[%s1275_s1 + $0x58] sm:$0xff]  ;;  %v1141_v26 = vld [vmem:[%s1277_s3 + $0x28] sm:$0xff]  ;;  %v44_v27 = vld [vmem:[%s1277_s3 + $0x20] sm:$0xff]  ;;  %p970_p0 = scmp.ne.s32.totalorder %s699_s12, %s969_s13  ;;  %p974_p1 = scmp.lt.s32.totalorder %s699_s12, %s699_s12 }
  0x11   :  { %103 = vperm.xlu0 %892, %v1104_v18   ;;  %98 = vperm.xlu1 %893, %v1109_v19   ;;  %v37_v28 = vld [vmem:[%s1275_s1 + $0x68] sm:$0xff]  ;;  %v38_v29 = vld [vmem:[%s1275_s1 + $0x70] sm:$0xff]  ;;  %v43_v30 = vld [vmem:[%s1277_s3 + $0x18] sm:$0xff]  ;;  %p975_p2 = scmp.lt.s32.totalorder %s973_s14, %s969_s13 }
  0x12   :  { %786 = vmatmul.mubr.msk.f32.gmra.mxu0 %vm136_vm0, %v31_v16  ;;  %v42_v31 = vld [vmem:[%s1277_s3 + $0x10] sm:$0xff]  ;;  %v39_v32 = vld [vmem:[%s1275_s1 + $0x78] sm:$0xff]  ;;  %v41_v33 = vld [vmem:[%s1277_s3 + $0x8] sm:$0xff] }
  0x13   :  { %788 = vmatprep.mubr.msk.f32.mxu0 %vm136_vm0, %v32_v17  ;;  %v40_v34 = vld [vmem:[%s1277_s3] sm:$0xff]  ;;  %v352_v36 = vld [vmem:[%s1276_s2 + $0x30] sm:$0xff]  ;;  %p976_p3 = por %p975_p2, %p974_p1 }
  0x14   :  { %v346_v35 = vld [vmem:[%s1276_s2] sm:$0xff]  ;;  %841 = vmatprep.mubr.f32.mxu1 %v352_v36 }
  0x15   :  { %93 = vperm.xlu0 %892, %v47_v22   ;;  %88 = vperm.xlu1 %893, %v1127_v23   ;;  %p977_p4 = pnand %p976_p3, %p970_p0 }
  0x16   :  { %789 = vmatmul.mubr.msk.f32.gmra.mxu0 %vm136_vm0, %v33_v20 }
  0x17   :  { %791 = vmatprep.mubr.msk.f32.mxu0 %vm136_vm0, %v34_v21 }
  0x19   :  { %83 = vperm.xlu0 %892, %v1141_v26   ;;  %78 = vperm.xlu1 %893, %v44_v27  }
  0x1a   :  { %792 = vmatmul.mubr.msk.f32.gmra.mxu0 %vm136_vm0, %v35_v24 }
  0x1b   :  { %794 = vmatprep.mubr.msk.f32.mxu0 %vm136_vm0, %v36_v25 }
  0x1d   :  { %73 = vperm.xlu0 %892, %v43_v30   ;;  %68 = vperm.xlu1 %893, %v42_v31  }
  0x1e   :  { %795 = vmatmul.mubr.msk.f32.gmra.mxu0 %vm136_vm0, %v37_v28 }
  0x1f   :  { %797 = vmatprep.mubr.msk.f32.mxu0 %vm136_vm0, %v38_v29 }
  0x21   :  { %63 = vperm.xlu0 %892, %v41_v33   ;;  %58 = vperm.xlu1 %893, %v40_v34  }
  0x22   :  { %798 = vmatmul.mubr.msk.f32.gmra.mxu0 %vm136_vm0, %v39_v32 }
  0x23   :  { %832 = vmatprep.mubr.f32.mxu0 %v346_v35 }
  0x25   :  { %894 = vset.pattern.permute.xlu1 %v992_v37  ;;  %896 = vset.pattern.permute.xlu0 %v993_v38 }
  0x26   :  { %367 = vperm.xlu1 %894, %v41_v33   ;;  %592 = vperm.xlu0 %896, %v41_v33  }
  0x2a   :  { %371 = vperm.xlu1 %894, %v42_v31   ;;  %604 = vperm.xlu0 %896, %v44_v27  }
  0x2e   :  { %379 = vperm.xlu1 %894, %v44_v27   ;;  %900 = vset.pattern.permute.xlu0 %v992_v37 }
  0x2f   :  { %363 = vperm.xlu0 %900, %v40_v34  }
  0x32   :  { %387 = vperm.xlu1 %894, %v1127_v23  }
  0x33   :  { %375 = vperm.xlu0 %900, %v43_v30  }
  0x36   :  { %395 = vperm.xlu1 %894, %v1109_v19  }
  0x37   :  { %383 = vperm.xlu0 %900, %v1141_v26  }
  0x3a   :  { %895 = vset.pattern.permute.xlu1 %v993_v38 }
  0x3b   :  { %588 = vperm.xlu1 %895, %v40_v34   ;;  %391 = vperm.xlu0 %900, %v47_v22  }
  0x3f   :  { %897 = vset.pattern.permute.xlu1 %v992_v37  ;;  %399 = vperm.xlu0 %900, %v1104_v18  }
  0x40   :  { %403 = vperm.xlu1 %897, %v1089_v15  }
  0x43   :  { %407 = vperm.xlu0 %900, %v1084_v14  }
  0x44   :  { %898 = vset.pattern.permute.xlu1 %v993_v38 }
  0x45   :  { %596 = vperm.xlu1 %898, %v42_v31  }
  0x47   :  { %419 = vperm.xlu0 %900, %v1064_v10  }
  0x49   :  { %600 = vperm.xlu1 %898, %v43_v30  }
  0x4b   :  { %903 = vset.pattern.permute.xlu0 %v993_v38 }
  0x4c   :  { %616 = vperm.xlu0 %903, %v47_v22  }
  0x4d   :  { %899 = vset.pattern.permute.xlu1 %v992_v37 }
  0x4e   :  { %411 = vperm.xlu1 %899, %v1069_v11  }
  0x50   :  { %628 = vperm.xlu0 %903, %v1089_v15  }
  0x52   :  { %415 = vperm.xlu1 %899, %v1054_v8  }
  0x54   :  { %636 = vperm.xlu0 %903, %v1069_v11  }
  0x56   :  { %901 = vset.pattern.permute.xlu1 %v993_v38 }
  0x57   :  { %608 = vperm.xlu1 %901, %v1141_v26  }
  0x58   :  { %644 = vperm.xlu0 %903, %v1064_v10  }
  0x5b   :  { %612 = vperm.xlu1 %901, %v1127_v23  }
  0x5f   :  { %902 = vset.pattern.permute.xlu1 %v992_v37 }
  0x60   :  { %423 = vperm.xlu1 %902, %v1049_v7  }
  0x64   :  { %904 = vset.pattern.permute.xlu1 %v993_v38 }
  0x65   :  { %620 = vperm.xlu1 %904, %v1109_v19  }
  0x69   :  { %624 = vperm.xlu1 %904, %v1104_v18  }
  0x6d   :  { %632 = vperm.xlu1 %904, %v1084_v14  }
  0x71   :  { %640 = vperm.xlu1 %904, %v1054_v8  }
  0x75   :  { %648 = vperm.xlu1 %904, %v1049_v7   ;;  %v359_v7 = vld [vmem:[%s1276_s2 + $0x68] sm:$0xff] }
  0x7f   :  { %v134_v44 = vpop.permute.xlu0 %133 }
  0x80   :  { %v124_v46 = vpop.permute.xlu1 %123 }
  0x83   :  { %v129_v49 = vpop.permute.xlu0 %128 }
  0x84   :  { %v119_v51 = vpop.permute.xlu1 %118 }
  0x88   :  { %v114_v54 = vpop.permute.xlu0 %113  ;;  %v109_v56 = vpop.permute.xlu1 %108 }
  0x8c   :  { %v104_v59 = vpop.permute.xlu0 %103  ;;  %v99_v62 = vpop.permute.xlu1 %98 }
  0x90   :  { %v94_v3 = vpop.permute.xlu0 %93  ;;  %v89_v5 = vpop.permute.xlu1 %88 }
  0x94   :  { %v84_v10 = vpop.permute.xlu0 %83  ;;  %v79_v12 = vpop.permute.xlu1 %78 }
  0x98   :  { %v74_v18 = vpop.permute.xlu0 %73  ;;  %v69_v20 = vpop.permute.xlu1 %68 }
  0x9c   :  { %v64_v24 = vpop.permute.xlu0 %63  ;;  %v59_v27 = vpop.permute.xlu1 %58 }
  0xc6   :  { %v1185_v39 = vpop.f32.mrf.mxu0 }
  0xc7   :  { %v257_v28 = vadd.f32 %v1185_v39, %v64_v24 }
  0xc8   :  { %v1188_v40 = vpop.f32.mrf.mxu0 }
  0xc9   :  { %v252_v30 = vadd.f32 %v1188_v40, %v59_v27  ;;  %v347_v40 = vld [vmem:[%s1276_s2 + $0x8] sm:$0xff] }
  0xca   :  { %v1190_v41 = vpop.f32.mrf.mxu0 }
  0xcb   :  { %v267_v22 = vadd.f32 %v1190_v41, %v74_v18  ;;  %v353_v41 = vld [vmem:[%s1276_s2 + $0x38] sm:$0xff] }
  0xcc   :  { %v1192_v42 = vpop.f32.mrf.mxu0 }
  0xcd   :  { %v262_v25 = vadd.f32 %v1192_v42, %v69_v20  ;;  %v348_v42 = vld [vmem:[%s1276_s2 + $0x10] sm:$0xff] }
  0xce   :  { %v1195_v43 = vpop.f32.mrf.mxu0 }
  0xcf   :  { %v277_v14 = vadd.f32 %v1195_v43, %v84_v10  ;;  %v354_v43 = vld [vmem:[%s1276_s2 + $0x40] sm:$0xff] }
  0xd0   :  { %v1198_v45 = vpop.f32.mrf.mxu0 }
  0xd1   :  { %v272_v8 = vadd.f32 %v1198_v45, %v79_v12  ;;  %v355_v45 = vld [vmem:[%s1276_s2 + $0x48] sm:$0xff] }
  0xd2   :  { %v787_v47 = vpop.f32.mrf.mxu0 }
  0xd3   :  { %v287_v13 = vadd.f32 %v787_v47, %v94_v3  ;;  %v356_v47 = vld [vmem:[%s1276_s2 + $0x50] sm:$0xff] }
  0xd4   :  { %v281_v48 = vpop.f32.mrf.mxu0 }
  0xd5   :  { %v282_v16 = vadd.f32 %v281_v48, %v89_v5  ;;  %v351_v48 = vld [vmem:[%s1276_s2 + $0x28] sm:$0xff] }
  0xd6   :  { %v790_v50 = vpop.f32.mrf.mxu0 }
  0xd7   :  { %v297_v9 = vadd.f32 %v790_v50, %v104_v59  ;;  %v358_v50 = vld [vmem:[%s1276_s2 + $0x60] sm:$0xff] }
  0xd8   :  { %v291_v52 = vpop.f32.mrf.mxu0 }
  0xd9   :  { %v292_v11 = vadd.f32 %v291_v52, %v99_v62  ;;  %v361_v52 = vld [vmem:[%s1276_s2 + $0x78] sm:$0xff] }
  0xda   :  { %v793_v53 = vpop.f32.mrf.mxu0 }
  0xdb   :  { %v307_v4 = vadd.f32 %v793_v53, %v114_v54  ;;  %v368_v53 = vpop.permute.xlu1 %367 }
  0xdc   :  { %v301_v55 = vpop.f32.mrf.mxu0 }
  0xdd   :  { %v302_v6 = vadd.f32 %v301_v55, %v109_v56 }
  0xde   :  { %v796_v57 = vpop.f32.mrf.mxu0 }
  0xdf   :  { %v317_v0 = vadd.f32 %v796_v57, %v124_v46  ;;  %v350_v46 = vld [vmem:[%s1276_s2 + $0x20] sm:$0xff]  ;;  %v372_v54 = vpop.permute.xlu1 %371 }
  0xe0   :  { %v311_v58 = vpop.f32.mrf.mxu0 }
  0xe1   :  { %v312_v2 = vadd.f32 %v311_v58, %v119_v51  ;;  %v360_v51 = vld [vmem:[%s1276_s2 + $0x70] sm:$0xff] }
  0xe2   :  { %v799_v60 = vpop.f32.mrf.mxu0 }
  0xe3   :  { %v327_v61 = vadd.f32 %v799_v60, %v134_v44  ;;  %v349_v44 = vld [vmem:[%s1276_s2 + $0x18] sm:$0xff]  ;;  %v380_v55 = vpop.permute.xlu1 %379  ;;  %v593_v60 = vpop.permute.xlu0 %592 }
  0xe4   :  { %v321_v63 = vpop.f32.mrf.mxu0 }
  0xe5   :  { %905 = vtanh.f32 %v327_v61  ;;  %v322_v1 = vadd.f32 %v321_v63, %v129_v49  ;;  %v357_v49 = vld [vmem:[%s1276_s2 + $0x58] sm:$0xff] }
  0xe7   :  { %907 = vtanh.f32 %v322_v1  ;;  %v388_v56 = vpop.permute.xlu1 %387  ;;  %v1259_v62 = vpop.permute.xlu0 %604 }
  0xe8   :  { %909 = vtanh.f32 %v317_v0 }
  0xe9   :  { %911 = vtanh.f32 %v312_v2 }
  0xea   :  { %913 = vtanh.f32 %v307_v4 }
  0xeb   :  { %915 = vtanh.f32 %v302_v6  ;;  %v396_v57 = vpop.permute.xlu1 %395  ;;  %v364_v0 = vpop.permute.xlu0 %363 }
  0xec   :  { %917 = vtanh.f32 %v297_v9 }
  0xed   :  { %919 = vtanh.f32 %v292_v11 }
  0xee   :  { %921 = vtanh.f32 %v287_v13 }
  0xef   :  { %923 = vtanh.f32 %v282_v16  ;;  %v589_v58 = vpop.permute.xlu1 %588  ;;  %v376_v2 = vpop.permute.xlu0 %375 }
  0xf0   :  { %925 = vtanh.f32 %v277_v14 }
  0xf1   :  { %927 = vtanh.f32 %v272_v8 }
  0xf2   :  { %v906_v15 = vpop.eup %905  ;;  %929 = vtanh.f32 %v267_v22 }
  0xf3   :  { %800 = vmatprep.subr.mxu0 %v906_v15  ;;  %856 = vmatprep.subr.mxu1 %v906_v15  ;;  %931 = vtanh.f32 %v262_v25  ;;  %v404_v59 = vpop.permute.xlu1 %403  ;;  %v384_v4 = vpop.permute.xlu0 %383 }
  0xf4   :  { %v908_v17 = vpop.eup %907  ;;  %801 = vmatpush3.msra.mxu0 %v906_v15  ;;  %872 = vmatpush3.msra.mxu1 %v906_v15  ;;  %933 = vtanh.f32 %v257_v28 }
  0xf5   :  { %802 = vmatprep.subr.mxu0 %v908_v17  ;;  %857 = vmatprep.subr.mxu1 %v908_v17  ;;  %v910_v19 = vpop.eup %909  ;;  %935 = vtanh.f32 %v252_v30 }
  0xf6   :  { %803 = vmatpush3.msra.mxu0 %v908_v17  ;;  %873 = vmatpush3.msra.mxu1 %v908_v17  ;;  %v912_v21 = vpop.eup %911 }
  0xf7   :  { %804 = vmatprep.subr.mxu0 %v910_v19  ;;  %858 = vmatprep.subr.mxu1 %v910_v19  ;;  %v914_v23 = vpop.eup %913  ;;  %v597_v61 = vpop.permute.xlu1 %596 }
  0xf8   :  { %805 = vmatpush3.msra.mxu0 %v910_v19  ;;  %874 = vmatpush3.msra.mxu1 %v910_v19  ;;  %v916_v26 = vpop.eup %915  ;;  %v392_v17 = vpop.permute.xlu0 %391 }
  0xf9   :  { %806 = vmatprep.subr.mxu0 %v912_v21  ;;  %859 = vmatprep.subr.mxu1 %v912_v21  ;;  %v918_v29 = vpop.eup %917 }
  0xfa   :  { %807 = vmatpush3.msra.mxu0 %v912_v21  ;;  %875 = vmatpush3.msra.mxu1 %v912_v21  ;;  %v920_v31 = vpop.eup %919 }
  0xfb   :  { %808 = vmatprep.subr.mxu0 %v914_v23  ;;  %860 = vmatprep.subr.mxu1 %v914_v23  ;;  %v922_v32 = vpop.eup %921  ;;  %v1261_v63 = vpop.permute.xlu1 %600 }
  0xfc   :  { %809 = vmatpush3.msra.mxu0 %v914_v23  ;;  %876 = vmatpush3.msra.mxu1 %v914_v23  ;;  %v924_v33 = vpop.eup %923  ;;  %v400_v28 = vpop.permute.xlu0 %399 }
  0xfd   :  { %810 = vmatprep.subr.mxu0 %v916_v26  ;;  %861 = vmatprep.subr.mxu1 %v916_v26  ;;  %v926_v34 = vpop.eup %925 }
  0xfe   :  { %811 = vmatpush3.msra.mxu0 %v916_v26  ;;  %877 = vmatpush3.msra.mxu1 %v916_v26  ;;  %v928_v35 = vpop.eup %927 }
  0xff   :  { %812 = vmatprep.subr.mxu0 %v918_v29  ;;  %862 = vmatprep.subr.mxu1 %v918_v29  ;;  %v930_v36 = vpop.eup %929  ;;  %v412_v1 = vpop.permute.xlu1 %411 }
 0x100   :  { %813 = vmatpush3.msra.mxu0 %v918_v29  ;;  %878 = vmatpush3.msra.mxu1 %v918_v29  ;;  %v932_v37 = vpop.eup %931 }
 0x101   :  { %814 = vmatprep.subr.mxu0 %v920_v31  ;;  %863 = vmatprep.subr.mxu1 %v920_v31  ;;  %v934_v38 = vpop.eup %933 }
 0x102   :  { %815 = vmatpush3.msra.mxu0 %v920_v31  ;;  %879 = vmatpush3.msra.mxu1 %v920_v31  ;;  %v936_v39 = vpop.eup %935 }
 0x103   :  { %816 = vmatprep.subr.mxu0 %v922_v32  ;;  %864 = vmatprep.subr.mxu1 %v922_v32  ;;  %v416_v3 = vpop.permute.xlu1 %415 }
 0x104   :  { %817 = vmatpush3.msra.mxu0 %v922_v32  ;;  %880 = vmatpush3.msra.mxu1 %v922_v32 }
 0x105   :  { %818 = vmatprep.subr.mxu0 %v924_v33  ;;  %865 = vmatprep.subr.mxu1 %v924_v33 }
 0x106   :  { %819 = vmatpush3.msra.mxu0 %v924_v33  ;;  %881 = vmatpush3.msra.mxu1 %v924_v33 }
 0x107   :  { %820 = vmatprep.subr.mxu0 %v926_v34  ;;  %866 = vmatprep.subr.mxu1 %v926_v34  ;;  %v1263_v13 = vpop.permute.xlu1 %608 }
 0x108   :  { %821 = vmatpush3.msra.mxu0 %v926_v34  ;;  %882 = vmatpush3.msra.mxu1 %v926_v34 }
 0x109   :  { %822 = vmatprep.subr.mxu0 %v928_v35  ;;  %867 = vmatprep.subr.mxu1 %v928_v35 }
 0x10a   :  { %823 = vmatpush3.msra.mxu0 %v928_v35  ;;  %883 = vmatpush3.msra.mxu1 %v928_v35 }
 0x10b   :  { %824 = vmatprep.subr.mxu0 %v930_v36  ;;  %868 = vmatprep.subr.mxu1 %v930_v36  ;;  %v613_v22 = vpop.permute.xlu1 %612 }
 0x10c   :  { %825 = vmatpush3.msra.mxu0 %v930_v36  ;;  %884 = vmatpush3.msra.mxu1 %v930_v36 }
 0x10d   :  { %826 = vmatprep.subr.mxu0 %v932_v37  ;;  %869 = vmatprep.subr.mxu1 %v932_v37 }
 0x10e   :  { %827 = vmatpush3.msra.mxu0 %v932_v37  ;;  %885 = vmatpush3.msra.mxu1 %v932_v37  ;;  %v408_v37 = vpop.permute.xlu0 %407 }
 0x10f   :  { %828 = vmatprep.subr.mxu0 %v934_v38  ;;  %870 = vmatprep.subr.mxu1 %v934_v38  ;;  %v424_v32 = vpop.permute.xlu1 %423 }
 0x110   :  { %829 = vmatpush3.msra.mxu0 %v934_v38  ;;  %886 = vmatpush3.msra.mxu1 %v934_v38 }
 0x111   :  { %830 = vmatprep.subr.mxu0 %v936_v39  ;;  %871 = vmatprep.subr.mxu1 %v936_v39 }
 0x112   :  { %831 = vmatpush3.msra.mxu0 %v936_v39  ;;  %887 = vmatpush3.msra.mxu1 %v936_v39 }
 0x113   :  { %833 = vmatmul.mubr.f32.vlgmr.msra.gmra.mxu0 %v347_v40  ;;  %842 = vmatmul.mubr.f32.vlgmr.msra.gmra.mxu1 %v353_v41 }
 0x114   :  { %835 = vmatprep.mubr.f32.mxu0 %v348_v42  ;;  %844 = vmatprep.mubr.f32.mxu1 %v354_v43 }
 0x117   :  { %836 = vmatmul.mubr.f32.gmra.mxu0 %v349_v44  ;;  %845 = vmatmul.mubr.f32.gmra.mxu1 %v355_v45  ;;  %v621_v45 = vpop.permute.xlu1 %620 }
 0x118   :  { %838 = vmatprep.mubr.f32.mxu0 %v350_v46  ;;  %847 = vmatprep.mubr.f32.mxu1 %v356_v47 }
 0x11b   :  { %839 = vmatmul.mubr.f32.gmra.mxu0 %v351_v48  ;;  %848 = vmatmul.mubr.f32.gmra.mxu1 %v357_v49  ;;  %v420_v49 = vpop.permute.xlu0 %419 }
 0x11c   :  { %850 = vmatprep.mubr.f32.mxu1 %v358_v50 }
 0x11f   :  { %851 = vmatmul.mubr.f32.gmra.mxu1 %v359_v7 }
 0x120   :  { %853 = vmatprep.mubr.f32.mxu1 %v360_v51 }
 0x123   :  { %854 = vmatmul.mubr.f32.gmra.mxu1 %v361_v52 }
 0x1d3   :  { %v834_v5 = vpop.f32.mrf.mxu0  ;;  %v843_v6 = vpop.f32.mrf.mxu1 }
 0x1d4   :  { %v498_v9 = vadd.f32 %v834_v5, %v368_v53  ;;  %v528_v30 = vadd.f32 %v843_v6, %v392_v17 }
 0x1d5   :  { %v492_v10 = vpop.f32.mrf.mxu0  ;;  %v522_v11 = vpop.f32.mrf.mxu1 }
 0x1d6   :  { %v493_v12 = vadd.f32 %v492_v10, %v364_v0  ;;  %937 = vtanh.f32 %v498_v9  ;;  %v523_v26 = vadd.f32 %v522_v11, %v388_v56 }
 0x1d7   :  { %v837_v15 = vpop.f32.mrf.mxu0  ;;  %v846_v16 = vpop.f32.mrf.mxu1 }
 0x1d8   :  { %939 = vtanh.f32 %v493_v12  ;;  %v508_v18 = vadd.f32 %v837_v15, %v376_v2  ;;  %v538_v35 = vadd.f32 %v846_v16, %v400_v28 }
 0x1d9   :  { %v502_v14 = vpop.f32.mrf.mxu0  ;;  %v532_v19 = vpop.f32.mrf.mxu1 }
 0x1da   :  { %v503_v20 = vadd.f32 %v502_v14, %v372_v54  ;;  %941 = vtanh.f32 %v508_v18  ;;  %v533_v31 = vadd.f32 %v532_v19, %v396_v57 }
 0x1db   :  { %v840_v8 = vpop.f32.mrf.mxu0  ;;  %v849_v21 = vpop.f32.mrf.mxu1 }
 0x1dc   :  { %943 = vtanh.f32 %v503_v20  ;;  %v518_v23 = vadd.f32 %v840_v8, %v384_v4  ;;  %v548_v43 = vadd.f32 %v849_v21, %v408_v37 }
 0x1dd   :  { %v512_v24 = vpop.f32.mrf.mxu0  ;;  %v542_v25 = vpop.f32.mrf.mxu1 }
 0x1de   :  { %v513_v27 = vadd.f32 %v512_v24, %v380_v55  ;;  %945 = vtanh.f32 %v518_v23  ;;  %v543_v39 = vadd.f32 %v542_v25, %v404_v59  ;;  %v617_v59 = vpop.permute.xlu0 %616 }
 0x1df   :  { %v852_v29 = vpop.f32.mrf.mxu1 }
 0x1e0   :  { %947 = vtanh.f32 %v513_v27  ;;  %v558_v51 = vadd.f32 %v852_v29, %v416_v3 }
 0x1e1   :  { %949 = vtanh.f32 %v523_v26  ;;  %v552_v33 = vpop.f32.mrf.mxu1 }
 0x1e2   :  { %951 = vtanh.f32 %v528_v30  ;;  %v553_v46 = vadd.f32 %v552_v33, %v412_v1 }
 0x1e3   :  { %v938_v34 = vpop.eup %937  ;;  %953 = vtanh.f32 %v533_v31  ;;  %v855_v40 = vpop.f32.mrf.mxu1 }
 0x1e4   :  { %v652_v42 = vmul.f32 %v938_v34, %v593_v60  ;;  %955 = vtanh.f32 %v538_v35  ;;  %v625_v60 = vpop.permute.xlu1 %624 }
 0x1e5   :  { %v940_v36 = vpop.eup %939  ;;  %957 = vtanh.f32 %v543_v39  ;;  %v562_v50 = vpop.f32.mrf.mxu1 }
 0x1e6   :  { %v651_v38 = vmul.f32 %v940_v36, %v589_v58  ;;  %959 = vtanh.f32 %v548_v43  ;;  %v563_v55 = vadd.f32 %v562_v50, %v420_v49 }
 0x1e7   :  { %v942_v41 = vpop.eup %941  ;;  %961 = vtanh.f32 %v553_v46 }
 0x1e8   :  { %v667_v48 = vadd.f32 %v652_v42, %v651_v38  ;;  %v654_v52 = vmul.f32 %v942_v41, %v1261_v63  ;;  %963 = vtanh.f32 %v558_v51  ;;  %v633_v10 = vpop.permute.xlu1 %632  ;;  %v689_v42 = vstv %s1278_s4 }
 0x1e9   :  { %v944_v44 = vpop.eup %943  ;;  %965 = vtanh.f32 %v563_v55 }
 0x1ea   :  { %v653_v47 = vmul.f32 %v944_v44, %v597_v61  ;;  %v568_v61 = vadd.f32 %v855_v40, %v424_v32 }
 0x1eb   :  { %v946_v7 = vpop.eup %945 }
 0x1ec   :  { %v668_v53 = vadd.f32 %v667_v48, %v653_v47  ;;  %v656_v0 = vmul.f32 %v946_v7, %v1263_v13  ;;  %967 = vtanh.f32 %v568_v61  ;;  %v641_v20 = vpop.permute.xlu1 %640 }
 0x1ed   :  { %v948_v54 = vpop.eup %947 }
 0x1ee   :  { %v655_v56 = vmul.f32 %v948_v54, %v1259_v62  ;;  %v669_v57 = vadd.f32 %v668_v53, %v654_v52  ;;  %v950_v58 = vpop.eup %949  ;;  %v629_v62 = vpop.permute.xlu0 %628 }
 0x1ef   :  { %v952_v2 = vpop.eup %951  ;;  %v657_v4 = vmul.f32 %v950_v58, %v613_v22 }
 0x1f0   :  { %v670_v1 = vadd.f32 %v669_v57, %v655_v56  ;;  %v954_v63 = vpop.eup %953  ;;  %v658_v5 = vmul.f32 %v952_v2, %v617_v59  ;;  %v649_v31 = vpop.permute.xlu1 %648 }
 0x1f1   :  { %v956_v9 = vpop.eup %955  ;;  %v659_v11 = vmul.f32 %v954_v63, %v621_v45 }
 0x1f2   :  { %v671_v3 = vadd.f32 %v670_v1, %v656_v0  ;;  %v958_v15 = vpop.eup %957  ;;  %v660_v16 = vmul.f32 %v956_v9, %v625_v60  ;;  %v637_v8 = vpop.permute.xlu0 %636 }
 0x1f3   :  { %v960_v18 = vpop.eup %959  ;;  %v661_v13 = vmul.f32 %v958_v15, %v629_v62 }
 0x1f4   :  { %v672_v6 = vadd.f32 %v671_v3, %v657_v4  ;;  %v962_v19 = vpop.eup %961  ;;  %v662_v21 = vmul.f32 %v960_v18, %v633_v10 }
 0x1f5   :  { %v964_v23 = vpop.eup %963  ;;  %v663_v24 = vmul.f32 %v962_v19, %v637_v8 }
 0x1f6   :  { %v673_v12 = vadd.f32 %v672_v6, %v658_v5  ;;  %v966_v26 = vpop.eup %965  ;;  %v664_v27 = vmul.f32 %v964_v23, %v641_v20  ;;  %v645_v30 = vpop.permute.xlu0 %644 }
 0x1f7   :  { %v665_v32 = vmul.f32 %v966_v26, %v645_v30 }
 0x1f8   :  { %v674_v17 = vadd.f32 %v673_v12, %v659_v11 }
 0x1f9   :  { %v968_v29 = vpop.eup %967 }
 0x1fa   :  { %v675_v14 = vadd.f32 %v674_v17, %v660_v16  ;;  %v666_v35 = vmul.f32 %v968_v29, %v649_v31 }
 0x1fc   :  { %v676_v22 = vadd.f32 %v675_v14, %v661_v13 }
 0x1fe   :  { %v677_v25 = vadd.f32 %v676_v22, %v662_v21 }
 0x200   :  { %v678_v28 = vadd.f32 %v677_v25, %v663_v24 }
 0x202   :  { %v679_v33 = vadd.f32 %v678_v28, %v664_v27 }
 0x204   :  { %v680_v34 = vadd.f32 %v679_v33, %v665_v32 }
 0x206   :  { %v681_v36 = vadd.f32 %v680_v34, %v666_v35 }
 0x208   :  { %v682_v37 = vrot.slane %v681_v36, 4 }
 0x20a   :  { %v683_v38 = vadd.f32 %v682_v37, %v681_v36 }
 0x20c   :  { %v684_v39 = vrot.slane %v683_v38, 2 }
 0x20e   :  { %v685_v40 = vadd.f32 %v684_v39, %v683_v38 }
 0x210   :  { %v686_v41 = vrot.slane %v685_v40, 1 }
 0x212   :  { %v687_v43 = vadd.f32 %v686_v41, %v685_v40 }
 0x214   :  { %v690_v44 = vadd.f32 %v689_v42, %v687_v43 }
 0x216   :  { %691 = vst [vmem:[#allocation3] sm:$0x1] %v690_v44 }
 0x217   :  { %980 = shalt.err (!%p977_p4)
}
 0x218   :  { %701 = dma.vmem_to_hbm [thread:$0]  %s699_s12, 16, %s1279_s5, [#allocation4]  }
 0x219   :  { %989 = dma.done.wait [#allocation4], 16  }
 0x21a   :  { %990 = vsyncadd [#allocation4], 4294967280 }
 0x21b   :  { %705 = vsyncpa [#allocation4], 1 }

</bundles_post_ra>
